<compile_context>
chip_gen: v7x
topology: tpu7x:2x2x1
jax: 0.10.0
libtpu: 0.0.40
codegen_flags: <defaults>
</compile_context>

<pallas_src>
import functools
import math

import jax
import jax.numpy as jnp
from jax.experimental import pallas as pl
from jax.experimental.pallas import tpu as pltpu

EPS = 1e-07


def _vmem_budget_bytes():
    """Half of physical VMEM (>= 50% headroom); 32 MiB fallback is v7x-safe."""
    try:
        cap = int(pltpu.get_tpu_info().vmem_capacity_bytes)
    except Exception:
        cap = 64 << 20
    return max(8 << 20, cap // 2)


def _row_fold_factor(b, n, itemsize):
    """Fold each sample into r rows so b*r fills the packed sublane dim."""
    packs = {4: 8, 2: 16, 1: 32}
    for target in (packs.get(itemsize, 8), 8):
        r = target // math.gcd(b, target)
        if n % r == 0:
            return r
    return 1  # rare fallback: partially-empty sublanes (still correct)


def _choose_tile_n(rows, m, itemsize, *, vmem_budget,
                   target_block_bytes=2 << 20, min_tiles=4):
    """Lane-tile width from VMEM budget + pipelining granularity."""
    if m <= 256:
        return m                                   # tiny: single full-extent block
    cap_vmem = vmem_budget // (4 * rows * itemsize)   # 2 inputs x 2 pipeline bufs
    cap_block = target_block_bytes // (rows * itemsize)
    cap_pipe = -(-m // min_tiles)                  # keep >= min_tiles grid steps
    tile_n = min(cap_vmem, cap_block, cap_pipe, m)
    return max(128, (tile_n // 128) * 128)


def _dice_reduce_kernel(x_ref, t_ref, inter_ref, card_ref, *,
                        tiles_per_chunk, tile_n, n_tiles, valid_cols,
                        last_tile_ragged, has_oob_tiles):
    k = pl.program_id(1)

    # Accumulator outputs are resident across the inner ("arbitrary") grid axis.
    @pl.when(k == 0)
    def _():
        inter_ref[...] = jnp.zeros_like(inter_ref)
        card_ref[...] = jnp.zeros_like(card_ref)

    def _accumulate(x, t):
        inter_ref[...] += jnp.sum(x * t, axis=1, keepdims=True)
        card_ref[...] += jnp.sum(x + t, axis=1, keepdims=True)

    if not last_tile_ragged and not has_oob_tiles:
        # Hot path: every tile fully valid -> no mask, no gating.
        _accumulate(x_ref[...].astype(jnp.float32),
                    t_ref[...].astype(jnp.float32))
        return

    p = pl.program_id(0)
    tile_idx = p * tiles_per_chunk + k            # unclamped logical tile index
    n_full = n_tiles - 1 if last_tile_ragged else n_tiles

    # Fully-valid tiles: unmasked accumulate.
    @pl.when(tile_idx < n_full)
    def _():
        _accumulate(x_ref[...].astype(jnp.float32),
                    t_ref[...].astype(jnp.float32))

    if last_tile_ragged:
        # Only the single ragged last tile pays the mask; clamped OOB tiles
        # (tile_idx >= n_tiles, num_parallel > 1 only) are skipped entirely.
        @pl.when(tile_idx == n_tiles - 1)
        def _():
            x = x_ref[...].astype(jnp.float32)
            t = t_ref[...].astype(jnp.float32)
            col = jax.lax.broadcasted_iota(jnp.int32, x.shape, 1)
            valid = col < (valid_cols - (n_tiles - 1) * tile_n)  # static bound
            x = jnp.where(valid, x, 0.0)
            t = jnp.where(valid, t, 0.0)
            _accumulate(x, t)


def _dice_sums(x2d, t2d, *, tile_n, num_parallel, vmem_budget):
    """Per-row sum(x*t) and sum(x+t) via a tiled Pallas reduction over columns."""
    rows, m = x2d.shape
    itemsize = jnp.dtype(x2d.dtype).itemsize

    if tile_n is None:
        tile_n = _choose_tile_n(rows, m, itemsize, vmem_budget=vmem_budget)
    else:
        tile_n = m if m <= tile_n else max(128, (tile_n // 128) * 128)

    n_tiles = pl.cdiv(m, tile_n)
    p_eff = max(1, min(num_parallel, n_tiles))
    tiles_per_chunk = pl.cdiv(n_tiles, p_eff)
    has_oob_tiles = p_eff * tiles_per_chunk > n_tiles
    last_tile_ragged = n_tiles * tile_n > m

    def in_index_map(p, k):
        blk = p * tiles_per_chunk + k
        if has_oob_tiles:
            # Clamped OOB tiles re-read the last block; the kernel skips them.
            blk = jnp.minimum(blk, n_tiles - 1)
        return (0, blk)

    kernel = functools.partial(
        _dice_reduce_kernel,
        tiles_per_chunk=tiles_per_chunk,
        tile_n=tile_n,
        n_tiles=n_tiles,
        valid_cols=m,
        last_tile_ragged=last_tile_ragged,
        has_oob_tiles=has_oob_tiles,
    )

    # 2 inputs x 2 pipeline buffers; small slack for outputs/descriptors.
    footprint = 4 * rows * tile_n * itemsize
    vmem_limit = int(max(vmem_budget, footprint + (4 << 20)))

    cost = pl.CostEstimate(
        flops=4 * rows * m,
        transcendentals=0,
        bytes_accessed=2 * rows * m * itemsize + 2 * p_eff * rows * 4,
    )

    inter_p, card_p = pl.pallas_call(
        kernel,
        out_shape=(
            jax.ShapeDtypeStruct((p_eff, rows, 1), jnp.float32),
            jax.ShapeDtypeStruct((p_eff, rows, 1), jnp.float32),
        ),
        grid_spec=pltpu.PrefetchScalarGridSpec(
            num_scalar_prefetch=0,
            grid=(p_eff, tiles_per_chunk),
            in_specs=[
                pl.BlockSpec((rows, tile_n), in_index_map),
                pl.BlockSpec((rows, tile_n), in_index_map),
            ],
            out_specs=[
                pl.BlockSpec((None, rows, 1), lambda p, k: (p, 0, 0)),
                pl.BlockSpec((None, rows, 1), lambda p, k: (p, 0, 0)),
            ],
        ),
        compiler_params=pltpu.CompilerParams(
            dimension_semantics=("parallel", "arbitrary"),
            vmem_limit_bytes=vmem_limit,
        ),
        cost_estimate=cost,
    )(x2d, t2d)

    # Combine per-chunk partial sums (tiny O(p_eff * rows) tail).
    return inter_p[:, :, 0].sum(axis=0), card_p[:, :, 0].sum(axis=0)


def dice_loss_percentile(x, target, *, percentile_val,
                         tile_n=None, num_parallel=1):
    """x, target: (B, C, D, H, W). Returns scalar loss (float32).

    num_parallel=1 is right for single-TensorCore parts (v5e/v6e); pass 2 on
    v7x to shard column chunks across both TensorCores.
    """
    b = x.shape[0]
    n = math.prod(x.shape[1:])
    itemsize = jnp.dtype(x.dtype).itemsize

    # Fill packed sublanes: fold each sample into r rows (8 f32 / 16 bf16 / 32 i8).
    r = _row_fold_factor(b, n, itemsize)
    rows, m = b * r, n // r

    # Contiguous reshape only — no pad, no dtype copy in the wrapper.
    x2d = x.reshape(rows, m)
    t2d = target.reshape(rows, m)

    inter_rows, card_rows = _dice_sums(
        x2d, t2d, tile_n=tile_n, num_parallel=num_parallel,
        vmem_budget=_vmem_budget_bytes())

    intersection = inter_rows.reshape(b, r).sum(axis=1)
    cardinality = card_rows.reshape(b, r).sum(axis=1)

    dice_score = 2.0 * intersection / (cardinality + EPS)

    # Matches torch: sorted(dice_score)[B - int(B*percentile/100)], ascending.
    # Note: percentile values making index == B (e.g. percentile_val == 0) would
    # raise IndexError in torch; JAX indexing clamps to the last element.
    index = b - int(b * percentile_val / 100)
    dice_sorted = jnp.sort(dice_score)[index]
    return 1.0 - dice_sorted


if __name__ == "__main__":
    key = jax.random.PRNGKey(0)
    kx, kt = jax.random.split(key)

    # Small 5D NCDHW shapes consistent with the module: (B, C, D, H, W).
    B, C, D, H, W = 4, 3, 8, 16, 18          # per-sample N = 6912 (ragged tiles)
    x = jax.nn.sigmoid(jax.random.normal(kx, (B, C, D, H, W), dtype=jnp.float32))
    target = (jax.random.uniform(kt, (B, C, D, H, W)) > 0.5).astype(jnp.float32)

    percentile_val = 50  # index = B - int(B * 50 / 100) = B // 2

    # Pure-JAX reference of the same math.
    inter_ref = jnp.sum(x * target, axis=(1, 2, 3, 4))
    card_ref = jnp.sum(x + target, axis=(1, 2, 3, 4))
    dice_ref = 2.0 * inter_ref / (card_ref + EPS)
    idx = B - int(B * percentile_val / 100)
    ref = 1.0 - jnp.sort(dice_ref)[idx]

    # 1) Default auto-tiled path (budget-derived tile_n, single-core grid,
    #    mask paid only on the last ragged tile).
    loss_fn = jax.jit(functools.partial(dice_loss_percentile,
                                        percentile_val=percentile_val))
    loss = loss_fn(x, target)
    jax.block_until_ready(loss)
    assert jnp.allclose(loss, ref, rtol=1e-5, atol=1e-5), (loss, ref)

    # 2) Small-tile + 2-way column-chunk path (v7x-style): exercises multi-tile
    #    accumulation, the gated ragged-tail mask, OOB-tile skipping and the
    #    per-chunk partial-sum combine.
    loss_fn_tiled = jax.jit(functools.partial(dice_loss_percentile,
                                              percentile_val=percentile_val,
                                              tile_n=512, num_parallel=2))
    loss_tiled = loss_fn_tiled(x, target)
    jax.block_until_ready(loss_tiled)
    assert jnp.allclose(loss_tiled, ref, rtol=1e-5, atol=1e-5), (loss_tiled, ref)

    # 3) bf16 path: rows folded to a multiple of 16 (full packed-vreg rows),
    #    per-tile upcast, f32 accumulation.
    x_bf = x.astype(jnp.bfloat16)
    t_bf = target.astype(jnp.bfloat16)
    inter_bf = jnp.sum(x_bf.astype(jnp.float32) * t_bf.astype(jnp.float32),
                       axis=(1, 2, 3, 4))
    card_bf = jnp.sum(x_bf.astype(jnp.float32) + t_bf.astype(jnp.float32),
                      axis=(1, 2, 3, 4))
    dice_bf = 2.0 * inter_bf / (card_bf + EPS)
    ref_bf = 1.0 - jnp.sort(dice_bf)[idx]

    loss_bf = jax.jit(functools.partial(dice_loss_percentile,
                                        percentile_val=percentile_val))(x_bf, t_bf)
    jax.block_until_ready(loss_bf)
    assert jnp.allclose(loss_bf, ref_bf, rtol=1e-4, atol=1e-4), (loss_bf, ref_bf)

    print("KERNEL_OK")
</pallas_src>

<mosaic_0001>
module attributes {stable_mosaic.version = 11 : i64} {
  func.func @_dice_reduce_kernel(%arg0: i32, %arg1: i32, %arg2: memref<8x768xf32, #tpu.memory_space<vmem>>, %arg3: memref<8x768xf32, #tpu.memory_space<vmem>>, %arg4: memref<1x8x1xf32, #tpu.memory_space<vmem>>, %arg5: memref<1x8x1xf32, #tpu.memory_space<vmem>>) attributes {dimension_semantics = [#tpu.dimension_semantics<parallel>, #tpu.dimension_semantics<arbitrary>], iteration_bounds = array<i64: 1, 5>, scalar_prefetch = 0 : i64, scratch_operands = 0 : i64, tpu.core_type = #tpu.core_type<tc>, window_params = [{transform_indices = @transform_0, window_bounds = array<i64: 8, 768>}, {transform_indices = @transform_1, window_bounds = array<i64: 8, 768>}, {transform_indices = @transform_2, window_bounds = array<i64: 1, 8, 1>}, {transform_indices = @transform_3, window_bounds = array<i64: 1, 8, 1>}]} {
    %c0_i32 = arith.constant 0 : i32
    %0 = arith.cmpi eq, %arg1, %c0_i32 : i32
    %1 = arith.extui %0 : i1 to i32
    %c0_i32_0 = arith.constant 0 : i32
    %2 = arith.cmpi ne, %1, %c0_i32_0 : i32
    scf.if %2 {
      %cst = arith.constant 0.000000e+00 : f32
      %11 = vector.broadcast %cst : f32 to vector<8x1xf32>
      %c0 = arith.constant 0 : index
      %c0_4 = arith.constant 0 : index
      %c0_5 = arith.constant 0 : index
      %12 = vector.load %arg4[%c0, %c0_4, %c0_5] : memref<1x8x1xf32, #tpu.memory_space<vmem>>, vector<1x8x1xf32>
      %13 = vector.shape_cast %12 : vector<1x8x1xf32> to vector<8x1xf32>
      %14 = vector.shape_cast %11 : vector<8x1xf32> to vector<1x8x1xf32>
      tpu.vector_store %arg4[%c0, %c0_4, %c0_5], %14 {strides = array<i32>} : memref<1x8x1xf32, #tpu.memory_space<vmem>>, vector<1x8x1xf32>,
      %cst_6 = arith.constant 0.000000e+00 : f32
      %15 = vector.broadcast %cst_6 : f32 to vector<8x1xf32>
      %c0_7 = arith.constant 0 : index
      %c0_8 = arith.constant 0 : index
      %c0_9 = arith.constant 0 : index
      %16 = vector.load %arg5[%c0_7, %c0_8, %c0_9] : memref<1x8x1xf32, #tpu.memory_space<vmem>>, vector<1x8x1xf32>
      %17 = vector.shape_cast %16 : vector<1x8x1xf32> to vector<8x1xf32>
      %18 = vector.shape_cast %15 : vector<8x1xf32> to vector<1x8x1xf32>
      tpu.vector_store %arg5[%c0_7, %c0_8, %c0_9], %18 {strides = array<i32>} : memref<1x8x1xf32, #tpu.memory_space<vmem>>, vector<1x8x1xf32>,
    } else {
    }
    %c5_i32 = arith.constant 5 : i32
    %3 = arith.muli %arg0, %c5_i32 : i32
    %4 = arith.addi %3, %arg1 : i32
    %c4_i32 = arith.constant 4 : i32
    %5 = arith.cmpi slt, %4, %c4_i32 : i32
    %6 = arith.extui %5 : i1 to i32
    %c0_i32_1 = arith.constant 0 : i32
    %7 = arith.cmpi ne, %6, %c0_i32_1 : i32
    scf.if %7 {
      %c0 = arith.constant 0 : index
      %c0_4 = arith.constant 0 : index
      %11 = vector.load %arg2[%c0, %c0_4] : memref<8x768xf32, #tpu.memory_space<vmem>>, vector<8x768xf32>
      %c0_5 = arith.constant 0 : index
      %c0_6 = arith.constant 0 : index
      %12 = vector.load %arg3[%c0_5, %c0_6] : memref<8x768xf32, #tpu.memory_space<vmem>>, vector<8x768xf32>
      %c0_7 = arith.constant 0 : index
      %c0_8 = arith.constant 0 : index
      %c0_9 = arith.constant 0 : index
      %13 = vector.load %arg4[%c0_7, %c0_8, %c0_9] : memref<1x8x1xf32, #tpu.memory_space<vmem>>, vector<1x8x1xf32>
      %14 = vector.shape_cast %13 : vector<1x8x1xf32> to vector<8x1xf32>
      %15 = arith.mulf %11, %12 : vector<8x768xf32>
      %cst = arith.constant dense<0.000000e+00> : vector<8xf32>
      %16 = vector.multi_reduction <add>, %15, %cst [1] : vector<8x768xf32> to vector<8xf32>
      %17 = vector.shape_cast %16 : vector<8xf32> to vector<8x1xf32>
      %18 = arith.addf %14, %17 : vector<8x1xf32>
      %c0_10 = arith.constant 0 : index
      %c0_11 = arith.constant 0 : index
      %c0_12 = arith.constant 0 : index
      %19 = vector.load %arg4[%c0_10, %c0_11, %c0_12] : memref<1x8x1xf32, #tpu.memory_space<vmem>>, vector<1x8x1xf32>
      %20 = vector.shape_cast %19 : vector<1x8x1xf32> to vector<8x1xf32>
      %21 = vector.shape_cast %18 : vector<8x1xf32> to vector<1x8x1xf32>
      tpu.vector_store %arg4[%c0_10, %c0_11, %c0_12], %21 {strides = array<i32>} : memref<1x8x1xf32, #tpu.memory_space<vmem>>, vector<1x8x1xf32>,
      %c0_13 = arith.constant 0 : index
      %c0_14 = arith.constant 0 : index
      %c0_15 = arith.constant 0 : index
      %22 = vector.load %arg5[%c0_13, %c0_14, %c0_15] : memref<1x8x1xf32, #tpu.memory_space<vmem>>, vector<1x8x1xf32>
      %23 = vector.shape_cast %22 : vector<1x8x1xf32> to vector<8x1xf32>
      %24 = arith.addf %11, %12 : vector<8x768xf32>
      %cst_16 = arith.constant dense<0.000000e+00> : vector<8xf32>
      %25 = vector.multi_reduction <add>, %24, %cst_16 [1] : vector<8x768xf32> to vector<8xf32>
      %26 = vector.shape_cast %25 : vector<8xf32> to vector<8x1xf32>
      %27 = arith.addf %23, %26 : vector<8x1xf32>
      %c0_17 = arith.constant 0 : index
      %c0_18 = arith.constant 0 : index
      %c0_19 = arith.constant 0 : index
      %28 = vector.load %arg5[%c0_17, %c0_18, %c0_19] : memref<1x8x1xf32, #tpu.memory_space<vmem>>, vector<1x8x1xf32>
      %29 = vector.shape_cast %28 : vector<1x8x1xf32> to vector<8x1xf32>
      %30 = vector.shape_cast %27 : vector<8x1xf32> to vector<1x8x1xf32>
      tpu.vector_store %arg5[%c0_17, %c0_18, %c0_19], %30 {strides = array<i32>} : memref<1x8x1xf32, #tpu.memory_space<vmem>>, vector<1x8x1xf32>,
    } else {
    }
    %c4_i32_2 = arith.constant 4 : i32
    %8 = arith.cmpi eq, %4, %c4_i32_2 : i32
    %9 = arith.extui %8 : i1 to i32
    %c0_i32_3 = arith.constant 0 : i32
    %10 = arith.cmpi ne, %9, %c0_i32_3 : i32
    scf.if %10 {
      %c0 = arith.constant 0 : index
      %c0_4 = arith.constant 0 : index
      %11 = vector.load %arg2[%c0, %c0_4] : memref<8x768xf32, #tpu.memory_space<vmem>>, vector<8x768xf32>
      %c0_5 = arith.constant 0 : index
      %c0_6 = arith.constant 0 : index
      %12 = vector.load %arg3[%c0_5, %c0_6] : memref<8x768xf32, #tpu.memory_space<vmem>>, vector<8x768xf32>
      %13 = tpu.iota {dimensions = array<i32: 1>} : vector<8x768xi32>
      %c384_i32 = arith.constant 384 : i32
      %14 = vector.broadcast %c384_i32 : i32 to vector<8x768xi32>
      %15 = arith.cmpi slt, %13, %14 : vector<8x768xi32>
      %cst = arith.constant 0.000000e+00 : f32
      %16 = vector.broadcast %cst : f32 to vector<8x768xf32>
      %17 = arith.select %15, %11, %16 : vector<8x768xi1>, vector<8x768xf32>
      %cst_7 = arith.constant 0.000000e+00 : f32
      %18 = vector.broadcast %cst_7 : f32 to vector<8x768xf32>
      %19 = arith.select %15, %12, %18 : vector<8x768xi1>, vector<8x768xf32>
      %c0_8 = arith.constant 0 : index
      %c0_9 = arith.constant 0 : index
      %c0_10 = arith.constant 0 : index
      %20 = vector.load %arg4[%c0_8, %c0_9, %c0_10] : memref<1x8x1xf32, #tpu.memory_space<vmem>>, vector<1x8x1xf32>
      %21 = vector.shape_cast %20 : vector<1x8x1xf32> to vector<8x1xf32>
      %22 = arith.mulf %17, %19 : vector<8x768xf32>
      %cst_11 = arith.constant dense<0.000000e+00> : vector<8xf32>
      %23 = vector.multi_reduction <add>, %22, %cst_11 [1] : vector<8x768xf32> to vector<8xf32>
      %24 = vector.shape_cast %23 : vector<8xf32> to vector<8x1xf32>
      %25 = arith.addf %21, %24 : vector<8x1xf32>
      %c0_12 = arith.constant 0 : index
      %c0_13 = arith.constant 0 : index
      %c0_14 = arith.constant 0 : index
      %26 = vector.load %arg4[%c0_12, %c0_13, %c0_14] : memref<1x8x1xf32, #tpu.memory_space<vmem>>, vector<1x8x1xf32>
      %27 = vector.shape_cast %26 : vector<1x8x1xf32> to vector<8x1xf32>
      %28 = vector.shape_cast %25 : vector<8x1xf32> to vector<1x8x1xf32>
      tpu.vector_store %arg4[%c0_12, %c0_13, %c0_14], %28 {strides = array<i32>} : memref<1x8x1xf32, #tpu.memory_space<vmem>>, vector<1x8x1xf32>,
      %c0_15 = arith.constant 0 : index
      %c0_16 = arith.constant 0 : index
      %c0_17 = arith.constant 0 : index
      %29 = vector.load %arg5[%c0_15, %c0_16, %c0_17] : memref<1x8x1xf32, #tpu.memory_space<vmem>>, vector<1x8x1xf32>
      %30 = vector.shape_cast %29 : vector<1x8x1xf32> to vector<8x1xf32>
      %31 = arith.addf %17, %19 : vector<8x768xf32>
      %cst_18 = arith.constant dense<0.000000e+00> : vector<8xf32>
      %32 = vector.multi_reduction <add>, %31, %cst_18 [1] : vector<8x768xf32> to vector<8xf32>
      %33 = vector.shape_cast %32 : vector<8xf32> to vector<8x1xf32>
      %34 = arith.addf %30, %33 : vector<8x1xf32>
      %c0_19 = arith.constant 0 : index
      %c0_20 = arith.constant 0 : index
      %c0_21 = arith.constant 0 : index
      %35 = vector.load %arg5[%c0_19, %c0_20, %c0_21] : memref<1x8x1xf32, #tpu.memory_space<vmem>>, vector<1x8x1xf32>
      %36 = vector.shape_cast %35 : vector<1x8x1xf32> to vector<8x1xf32>
      %37 = vector.shape_cast %34 : vector<8x1xf32> to vector<1x8x1xf32>
      tpu.vector_store %arg5[%c0_19, %c0_20, %c0_21], %37 {strides = array<i32>} : memref<1x8x1xf32, #tpu.memory_space<vmem>>, vector<1x8x1xf32>,
    } else {
    }
    return
  }
  func.func @transform_0(%arg0: i32, %arg1: i32) -> (i32, i32) {
    %c5_i32 = arith.constant 5 : i32
    %0 = arith.muli %arg0, %c5_i32 : i32
    %1 = arith.addi %0, %arg1 : i32
    %c0_i32 = arith.constant 0 : i32
    %c0_i32_0 = arith.constant 0 : i32
    return %c0_i32, %1 : i32, i32
  }
  func.func @transform_1(%arg0: i32, %arg1: i32) -> (i32, i32) {
    %c5_i32 = arith.constant 5 : i32
    %0 = arith.muli %arg0, %c5_i32 : i32
    %1 = arith.addi %0, %arg1 : i32
    %c0_i32 = arith.constant 0 : i32
    %c0_i32_0 = arith.constant 0 : i32
    return %c0_i32, %1 : i32, i32
  }
  func.func @transform_2(%arg0: i32, %arg1: i32) -> (i32, i32, i32) {
    %c0_i32 = arith.constant 0 : i32
    %c0_i32_0 = arith.constant 0 : i32
    %c0_i32_1 = arith.constant 0 : i32
    return %arg0, %c0_i32, %c0_i32_0 : i32, i32, i32
  }
  func.func @transform_3(%arg0: i32, %arg1: i32) -> (i32, i32, i32) {
    %c0_i32 = arith.constant 0 : i32
    %c0_i32_0 = arith.constant 0 : i32
    %c0_i32_1 = arith.constant 0 : i32
    return %arg0, %c0_i32, %c0_i32_0 : i32, i32, i32
  }
}

</mosaic_0001>

<bundles_post_ra>
// kernel: dice_loss_percentile.1
= control target key start
LH: loop header
LB: loop body
LE: loop exit
PB: predicated region body
PF: predicated region fallthrough
CT: control target
= control target key end

     0   :  { %s598_s12 = smov 0   ;;  %s600_s13 = smov 0   ;;  %s689_s0 = inlined_call_operand.vmem [shape: f32[8,3456], index: 0, kind: input, shape index: {}]   ;;  %s690_s1 = inlined_call_operand.vmem [shape: f32[8,3456], index: 1, kind: input, shape index: {}]   ;;  %s691_s2 = inlined_call_operand.vmem [shape: f32[1,8,1], index: 2, kind: output, shape index: {0}]   ;;  %s692_s3 = inlined_call_operand.vmem [shape: f32[1,8,1], index: 3, kind: output, shape index: {1}]  }
   0x1   :  { %s602_s14 = smov 0  }
   0x2 LB: > { %s23_s15 = sadd.s32 1, %s571_s13  ;;  %p518_p0 = scmp.ge.s32.totalorder %s575_s14, 1  ;;  %s575_s14 = sphi %s602_s14, %s14_s14   ;;  %s571_s13 = sphi %s600_s13, %s694_s13   ;;  %s567_s12 = sphi %s598_s12, %s693_s12  }
   0x3   : > { %p24_p1 = scmp.ge.s32.totalorder %s23_s15, 5  ;;  %p196_p2 = scmp.lt.s32.totalorder %s575_s14, 6 }
   0x5   : > { %s696_s15 = smov (%p24_p1, %s23_s15), 0  ;;  %p197_p3 = pnand %p518_p0, %p196_p2 }
   0x6   : > { %s242_s16 = smul.u32 (!%p197_p3), 6, %s567_s12  ;;  %p521_p5 = scmp.ne.s32.totalorder (!%p197_p3), %s567_s12, 0 }
   0x7   : > { %200 = sbr.rel (%p197_p3) target bundleno = 343 (0x157), region = 28 }
   0x8   : > { %p247_p4 = scmp.lt.s32.totalorder (!%p197_p3), %s242_s16, 26 }
   0xe   : > { %s698_s16 = smov (!%p247_p4, %s242_s16), 26  ;;  %287 = sbr.rel (%p521_p5) target bundleno = 21 (0x15), region = 32 }
   0xf   : > { %s519_s17 = sshll.u32 %s698_s16, 3  ;;  %vm288_vm0 = vcmask (!%p521_p5), 7168   ;;  %v577_v0 = vmov (!%p521_p5), 0.0  }
  0x10   : > { %s622_s20 = scalar_lea.vmem %s689_s0, %s519_s17  ;;  %s627_s23 = scalar_lea.vmem %s690_s1, %s519_s17  ;;  %289 = vst.msk [vmem:[%s691_s2] sm:$0xff] (!%p521_p5), %vm288_vm0, %v577_v0  ;;  %290 = vst.msk [vmem:[%s692_s3] sm:$0xff] (!%p521_p5), %vm288_vm0, %v577_v0 }
  0x15 PF: > { %p522_p6 = scmp.ge.s32.totalorder %s567_s12, 4 }
  0x16   : > { %v297_v1 = vld [vmem:[%s622_s20] sm:$0xff] (!%p522_p6)  ;;  %v298_v2 = vld [vmem:[%s622_s20 + $0x8] sm:$0xff] (!%p522_p6)  ;;  %v299_v3 = vld [vmem:[%s622_s20 + $0x10] sm:$0xff] (!%p522_p6)  ;;  %vm324_vm1 = vcmask (!%p522_p6), 7168  }
  0x17   : > { %296 = sbr.rel (%p522_p6) target bundleno = 185 (0xb9), region = 36  ;;  %v300_v4 = vld [vmem:[%s622_s20 + $0x18] sm:$0xff] (!%p522_p6)  ;;  %v303_v5 = vld [vmem:[%s627_s23] sm:$0xff] (!%p522_p6)  ;;  %v304_v6 = vld [vmem:[%s627_s23 + $0x8] sm:$0xff] (!%p522_p6) }
  0x18   : > { %v305_v7 = vld [vmem:[%s627_s23 + $0x10] sm:$0xff] (!%p522_p6)  ;;  %v306_v8 = vld [vmem:[%s627_s23 + $0x18] sm:$0xff] (!%p522_p6)  ;;  %v310_v9 = vmul.f32 (!%p522_p6), %v303_v5, %v297_v1  ;;  %v311_v10 = vmul.f32 (!%p522_p6), %v304_v6, %v298_v2  ;;  %v327_v12 = vadd.f32 (!%p522_p6), %v303_v5, %v297_v1  ;;  %v301_v13 = vld [vmem:[%s622_s20 + $0x20] sm:$0xff] (!%p522_p6)  ;;  %v328_v15 = vadd.f32 (!%p522_p6), %v304_v6, %v298_v2 }
  0x19   : > { %v312_v11 = vmul.f32 (!%p522_p6), %v305_v7, %v299_v3  ;;  %v307_v14 = vld [vmem:[%s627_s23 + $0x20] sm:$0xff] (!%p522_p6)  ;;  %v313_v16 = vmul.f32 (!%p522_p6), %v306_v8, %v300_v4  ;;  %v329_v18 = vadd.f32 (!%p522_p6), %v305_v7, %v299_v3  ;;  %v302_v19 = vld [vmem:[%s622_s20 + $0x28] sm:$0xff] (!%p522_p6)  ;;  %v330_v21 = vadd.f32 (!%p522_p6), %v306_v8, %v300_v4 }
  0x1a   : > { %v316_v17 = vadd.f32 (!%p522_p6), %v311_v10, %v310_v9  ;;  %v308_v20 = vld [vmem:[%s627_s23 + $0x28] sm:$0xff] (!%p522_p6)  ;;  %v333_v22 = vadd.f32 (!%p522_p6), %v328_v15, %v327_v12  ;;  %v314_v23 = vmul.f32 (!%p522_p6), %v307_v14, %v301_v13  ;;  %v331_v25 = vadd.f32 (!%p522_p6), %v307_v14, %v301_v13  ;;  %v309_v35 = vld [vmem:[%s691_s2] sm:$0xff] (!%p522_p6) }
  0x1b   : > { %v315_v27 = vmul.f32 (!%p522_p6), %v308_v20, %v302_v19  ;;  %v332_v31 = vadd.f32 (!%p522_p6), %v308_v20, %v302_v19  ;;  %v326_v38 = vld [vmem:[%s692_s3] sm:$0xff] (!%p522_p6) }
  0x1c   : > { %v317_v24 = vadd.f32 (!%p522_p6), %v316_v17, %v312_v11  ;;  %v334_v26 = vadd.f32 (!%p522_p6), %v333_v22, %v329_v18 }
  0x1e   : > { %v318_v28 = vadd.f32 %v317_v24, %v313_v16  ;;  %v335_v29 = vadd.f32 %v334_v26, %v330_v21 }
  0x20   : > { %v319_v30 = vadd.f32 %v318_v28, %v314_v23  ;;  %v336_v32 = vadd.f32 %v335_v29, %v331_v25 }
  0x22   : > { %v320_v33 = vadd.f32 %v319_v30, %v315_v27  ;;  %v337_v34 = vadd.f32 %v336_v32, %v332_v31 }
  0x24   : > { %321 = vadd.xlane.f32.xlu0 %v320_v33 }
  0x28   : > { %338 = vadd.xlane.f32.xlu0 %v337_v34 }
  0xb1   : > { %v322_v36 = vpop.xlane.xlu0 %321 }
  0xb2   : > { %v323_v37 = vadd.f32 %v322_v36, %v309_v35 }
  0xb4   : > { %325 = vst.msk [vmem:[%s691_s2] sm:$0xff] %vm324_vm1, %v323_v37 }
  0xb5   : > { %v339_v39 = vpop.xlane.xlu0 %338 }
  0xb6   : > { %v340_v40 = vadd.f32 %v339_v39, %v326_v38 }
  0xb8   : > { %341 = vst.msk [vmem:[%s692_s3] sm:$0xff] %vm324_vm1, %v340_v40 }
  0xb9 PF: > { %p523_p7 = scmp.ne.s32.totalorder %s567_s12, 4 }
  0xba   : > { %v346_v41 = vld [vmem:[%s622_s20] sm:$0xff] (!%p523_p7)  ;;  %v347_v42 = vld [vmem:[%s622_s20 + $0x8] sm:$0xff] (!%p523_p7)  ;;  %v348_v43 = vld [vmem:[%s622_s20 + $0x10] sm:$0xff] (!%p523_p7)  ;;  %vm398_vm2 = vcmask (!%p523_p7), 7168  }
  0xbb   : > { %345 = sbr.rel (%p523_p7) target bundleno = 343 (0x157), region = 40  ;;  %v352_v44 = vld [vmem:[%s627_s23] sm:$0xff] (!%p523_p7)  ;;  %v353_v45 = vld [vmem:[%s627_s23 + $0x8] sm:$0xff] (!%p523_p7)  ;;  %v354_v46 = vld [vmem:[%s627_s23 + $0x10] sm:$0xff] (!%p523_p7) }
  0xbc   : > { %v384_v47 = vmul.f32 (!%p523_p7), %v352_v44, %v346_v41  ;;  %v385_v48 = vmul.f32 (!%p523_p7), %v353_v45, %v347_v42  ;;  %v386_v49 = vmul.f32 (!%p523_p7), %v354_v46, %v348_v43  ;;  %v401_v50 = vadd.f32 (!%p523_p7), %v352_v44, %v346_v41  ;;  %v383_v57 = vld [vmem:[%s691_s2] sm:$0xff] (!%p523_p7) }
  0xbd   : > { %v402_v51 = vadd.f32 (!%p523_p7), %v353_v45, %v347_v42  ;;  %v403_v53 = vadd.f32 (!%p523_p7), %v354_v46, %v348_v43 }
  0xbe   : > { %v390_v52 = vadd.f32 (!%p523_p7), %v385_v48, %v384_v47 }
  0xbf   : > { %v407_v54 = vadd.f32 (!%p523_p7), %v402_v51, %v401_v50  ;;  %v400_v60 = vld [vmem:[%s692_s3] sm:$0xff] (!%p523_p7) }
  0xc0   : > { %v391_v55 = vadd.f32 (!%p523_p7), %v390_v52, %v386_v49 }
  0xc1   : > { %v408_v56 = vadd.f32 (!%p523_p7), %v407_v54, %v403_v53 }
  0xc2   : > { %395 = vadd.xlane.f32.xlu0 %v391_v55 }
  0xc6   : > { %412 = vadd.xlane.f32.xlu0 %v408_v56 }
 0x14f   : > { %v396_v58 = vpop.xlane.xlu0 %395 }
 0x150   : > { %v397_v59 = vadd.f32 %v396_v58, %v383_v57 }
 0x152   : > { %399 = vst.msk [vmem:[%s691_s2] sm:$0xff] %vm398_vm2, %v397_v59 }
 0x153   : > { %v413_v61 = vpop.xlane.xlu0 %412 }
 0x154   : > { %v414_v62 = vadd.f32 %v413_v61, %v400_v60 }
 0x156   : > { %415 = vst.msk [vmem:[%s692_s3] sm:$0xff] %vm398_vm2, %v414_v62 }
 0x157 PF: > { %s14_s14 = sadd.s32 1, %s575_s14   ;;  %s693_s12 = smov %s571_s13 }
 0x158   : > { %p11_p8 = scmp.ge.s32.totalorder %s14_s14, 7   ;;  %s694_s13 = smov %s696_s15 }
 0x15a   :  { %13 = sbr.rel (!%p11_p8) target bundleno = 2 (0x2), region = 85 }

</bundles_post_ra>
